<compile_context>
chip_gen: v6e
topology: v6e:2x2x1
jax: 0.10.0
libtpu: 0.0.40
codegen_flags: <defaults>
</compile_context>

<pallas_src>
import numpy as np
import jax
import jax.numpy as jnp
from jax.experimental import pallas as pl
from jax.experimental.pallas import tpu as pltpu

POOL_SIZES = (1, 2, 3, 4)
_AREAS = tuple(s * s for s in POOL_SIZES)                     # 1, 4, 9, 16
_OFFSETS = tuple(int(o) for o in np.concatenate(([0], np.cumsum(_AREAS)[:-1])))
S_TOT = 32                     # 30 real pooled columns, padded to 32
BN_EPS = 1e-5
_VMEM_BUDGET = 40 * 2 ** 20    # conservative working budget (v7x-safe)


# --------------------------------------------------------------------------
# Host-side constant matrices
# --------------------------------------------------------------------------
def _adaptive_avg_matrix(in_size, out_size):
    """(out_size, in_size) row-stochastic matrix matching F.adaptive_avg_pool2d."""
    A = np.zeros((out_size, in_size), dtype=np.float32)
    for i in range(out_size):
        start = (i * in_size) // out_size
        end = -((-(i + 1) * in_size) // out_size)  # ceil
        A[i, start:end] = 1.0 / (end - start)
    return A


def _bilinear_matrix(out_size, in_size):
    """(out_size, in_size) interpolation weights: bilinear, align_corners=True."""
    L = np.zeros((out_size, in_size), dtype=np.float32)
    if in_size == 1:
        L[:, 0] = 1.0
        return L
    for o in range(out_size):
        src = o * (in_size - 1) / (out_size - 1)
        i0 = min(int(np.floor(src)), in_size - 2)
        frac = src - i0
        L[o, i0] += 1.0 - frac
        L[o, i0 + 1] += frac
    return L


# --------------------------------------------------------------------------
# Kernels
# --------------------------------------------------------------------------
def _pool_conv_kernel(x_ref, p_ref, w_ref, b_ref, m_ref, z_ref, acc_ref):
    """Fused adaptive-avg-pool (all 4 branches, reduced over HW tiles) followed
    by the folded 1x1-conv/BN/ReLU and the block-diagonal branch mask."""
    j = pl.program_id(1)
    nb, C, hw_t = x_ref.shape

    @pl.when(j == 0)
    def _():
        acc_ref[...] = jnp.zeros_like(acc_ref)

    xf = x_ref[...].reshape(nb * C, hw_t)
    acc_ref[...] += jnp.dot(xf, p_ref[...], preferred_element_type=jnp.float32)

    @pl.when(j == pl.num_programs(1) - 1)
    def _():
        pooled = acc_ref[...].reshape(nb, C, S_TOT)              # (b, c, s)
        w_b = jnp.broadcast_to(w_ref[...][None], (nb, C, C))     # (b, o, c)
        # Batched conv (BN scale pre-folded into w rows); no scratch round-trip.
        y = jnp.einsum('boc,bcs->bos', w_b, pooled,
                       preferred_element_type=jnp.float32)
        z = jnp.maximum(y + b_ref[...][None], 0.0) * m_ref[...][None]
        z_ref[...] = z.astype(z_ref.dtype)


def _upsample_kernel(z_ref, l_ref, o_ref):
    """Fused bilinear upsample (align_corners=True) for all branches, streamed
    over lane-dense HW output tiles."""
    nb, C, S = z_ref.shape
    feat = jnp.dot(z_ref[...].reshape(nb * C, S), l_ref[...],
                   preferred_element_type=jnp.float32)
    o_ref[...] = feat.reshape(nb, C, o_ref.shape[-1]).astype(o_ref.dtype)


# --------------------------------------------------------------------------
# Tiling heuristics (VMEM-budget driven)
# --------------------------------------------------------------------------
def _pick_nb(N, C, HW, budget=_VMEM_BUDGET):
    """Samples per grid step: budget-driven; keep >= 2 grid rows so both v7x
    TensorCores get work."""
    for cand in range(min(N, 8), 0, -1):
        if N % cand:
            continue
        if cand > 1 and N // cand < 2:
            continue
        if 2 * 2 * cand * C * HW * 4 > budget:   # double-buffered x + out tiles
            continue
        return cand
    return 1


def _pick_hw_tile(HW, C, nb, budget=_VMEM_BUDGET):
    """Largest HW tile (divisor of HW, lane-aligned) whose streaming blocks fit."""
    def fits(t):
        return 2 * 2 * nb * C * t * 4 + 2 * S_TOT * t * 4 <= budget
    if fits(HW):
        return HW
    best = 0
    for t in range(128, HW, 128):
        if HW % t == 0 and fits(t):
            best = t
    if best == 0:
        # TODO(synk): tiling for huge HW with no 128-aligned divisor (keep W as
        # the lane axis instead of flattened H*W); fall back to whole-HW blocks.
        best = HW
    return best


# --------------------------------------------------------------------------
# Wrapper
# --------------------------------------------------------------------------
def pyramid_pooling(x, conv_w, bn_gamma, bn_beta, bn_mean, bn_var,
                    eps=BN_EPS, param_dtype=jnp.float32, return_concat=True):
    N, C, H, W = x.shape
    Cout = C // 4
    HW = H * W
    x_flat = x.reshape(N, C, HW)
    f32b = 4

    # ---- fused (stacked, tightly packed) branch matrices -------------------
    P_all = np.zeros((HW, S_TOT), np.float32)     # pooling, 4 packed column blocks
    L_all = np.zeros((S_TOT, HW), np.float32)     # upsample, 4 packed row blocks
    mask_np = np.zeros((C, S_TOT), np.float32)    # block-diagonal branch mask
    w_rows, b_rows = [], []
    for k, s in enumerate(POOL_SIZES):
        off = _OFFSETS[k]
        A = _adaptive_avg_matrix(H, s)
        B = _adaptive_avg_matrix(W, s)
        P_all[:, off:off + s * s] = np.kron(A, B).T
        Lh = _bilinear_matrix(H, s)
        Lw = _bilinear_matrix(W, s)
        L_all[off:off + s * s, :] = np.kron(Lh, Lw).T
        mask_np[k * Cout:(k + 1) * Cout, off:off + s * s] = 1.0
        scale_k = np.asarray(bn_gamma[k]) / np.sqrt(np.asarray(bn_var[k]) + eps)
        # Fold eval-mode BN scale into the 1x1-conv rows; bias stays separate.
        w_rows.append(scale_k[:, None] * np.asarray(conv_w[k]).reshape(Cout, C))
        b_rows.append(np.asarray(bn_beta[k]) - np.asarray(bn_mean[k]) * scale_k)

    W_all = jnp.asarray(np.concatenate(w_rows, axis=0), dtype=param_dtype)  # (C, C)
    bias_all = jnp.asarray(np.concatenate(b_rows).reshape(C, 1), dtype=jnp.float32)
    mask = jnp.asarray(mask_np)
    P_all = jnp.asarray(P_all, dtype=param_dtype)
    L_all = jnp.asarray(L_all, dtype=param_dtype)

    nb = _pick_nb(N, C, HW)
    hw_t = _pick_hw_tile(HW, C, nb)
    n_hw = HW // hw_t
    nbatch = N // nb
    pbytes = jnp.dtype(param_dtype).itemsize

    # Scoped-VMEM sizing (raise above v5e/v6e defaults when blocks need it).
    blk_a = (2 * nb * C * hw_t * f32b + 2 * hw_t * S_TOT * pbytes
             + C * C * pbytes + C * f32b + C * S_TOT * f32b
             + 2 * nb * C * S_TOT * f32b + nb * C * S_TOT * f32b)
    blk_b = (2 * nb * C * S_TOT * f32b + 2 * S_TOT * hw_t * pbytes
             + 2 * nb * C * hw_t * f32b)
    vmem_a = int(min(128 << 20, max(32 << 20, (5 * blk_a) // 4)))
    vmem_b = int(min(128 << 20, max(32 << 20, (5 * blk_b) // 4)))

    cost_a = pl.CostEstimate(
        flops=int(2 * N * C * HW * S_TOT + 2 * N * C * C * S_TOT),
        transcendentals=0,
        bytes_accessed=int(N * C * HW * f32b + N * C * S_TOT * f32b
                           + (HW * S_TOT + C * C) * pbytes
                           + (C + C * S_TOT) * f32b))
    cost_b = pl.CostEstimate(
        flops=int(2 * N * C * S_TOT * HW),
        transcendentals=0,
        bytes_accessed=int(N * C * S_TOT * f32b + N * C * HW * f32b
                           + S_TOT * HW * pbytes))

    # ---- kernel A: pooling (HW reduction) + folded 1x1 conv/BN/ReLU --------
    def _pool_conv_call(single_buffer_params):
        def const_spec(shape):
            if single_buffer_params:
                return pl.BlockSpec(shape, lambda b, j: (0,) * len(shape),
                                    pipeline_mode=pl.Buffered(1))
            return pl.BlockSpec(shape, lambda b, j: (0,) * len(shape))

        return pl.pallas_call(
            _pool_conv_kernel,
            out_shape=jax.ShapeDtypeStruct((N, C, S_TOT), jnp.float32),
            grid=(nbatch, n_hw),
            in_specs=[
                pl.BlockSpec((nb, C, hw_t), lambda b, j: (b, 0, j)),   # x
                pl.BlockSpec((hw_t, S_TOT), lambda b, j: (j, 0)),      # P_all
                const_spec((C, C)),                                    # W (BN-scaled)
                const_spec((C, 1)),                                    # bias
                const_spec((C, S_TOT)),                                # mask
            ],
            out_specs=pl.BlockSpec((nb, C, S_TOT), lambda b, j: (b, 0, 0)),
            scratch_shapes=[pltpu.VMEM((nb * C, S_TOT), jnp.float32)],
            compiler_params=pltpu.CompilerParams(
                dimension_semantics=("parallel", "arbitrary"),
                vmem_limit_bytes=vmem_a),
            cost_estimate=cost_a,
        )(x_flat, P_all, W_all, bias_all, mask)

    try:
        z = _pool_conv_call(True)      # single-buffer the grid-invariant params
    except Exception:                  # older jax without Buffered(1) support
        z = _pool_conv_call(False)

    # ---- kernel B: streaming bilinear upsample over HW tiles ---------------
    feat = pl.pallas_call(
        _upsample_kernel,
        out_shape=jax.ShapeDtypeStruct((N, C, HW), x.dtype),
        grid=(nbatch, n_hw),
        in_specs=[
            pl.BlockSpec((nb, C, S_TOT), lambda b, j: (b, 0, 0)),  # z (1 fetch / b)
            pl.BlockSpec((S_TOT, hw_t), lambda b, j: (0, j)),      # L_all tile
        ],
        out_specs=pl.BlockSpec((nb, C, hw_t), lambda b, j: (b, 0, j)),
        compiler_params=pltpu.CompilerParams(
            dimension_semantics=("parallel", "parallel"),
            vmem_limit_bytes=vmem_b),
        cost_estimate=cost_b,
    )(z, L_all)

    feat = feat.reshape(N, C, H, W)
    if return_concat:
        # The kernels no longer burn HBM bandwidth on the identity pass-through;
        # consumers that can take (x, feat) separately should pass
        # return_concat=False to skip this XLA concat copy as well.
        return jnp.concatenate([x, feat], axis=1)
    return x, feat


# --------------------------------------------------------------------------
# Pure-JAX reference (same math as F.adaptive_avg_pool2d / 1x1 conv /
# eval BatchNorm / ReLU / bilinear-align_corners upsample / concat)
# --------------------------------------------------------------------------
def ref_forward(x, conv_w, bn_gamma, bn_beta, bn_mean, bn_var, eps=BN_EPS):
    N, C, H, W = x.shape
    Cout = C // 4
    feats = [x]
    for k, s in enumerate(POOL_SIZES):
        A = jnp.asarray(_adaptive_avg_matrix(H, s))
        B = jnp.asarray(_adaptive_avg_matrix(W, s))
        pooled = jnp.einsum('ih,nchw,jw->ncij', A, x, B)
        y = jnp.einsum('oc,ncij->noij', conv_w[k].reshape(Cout, C), pooled)
        scale = bn_gamma[k] / jnp.sqrt(bn_var[k] + eps)
        bias = bn_beta[k] - bn_mean[k] * scale
        z = jnp.maximum(y * scale[None, :, None, None] + bias[None, :, None, None], 0.0)
        Lh = jnp.asarray(_bilinear_matrix(H, s))
        Lw = jnp.asarray(_bilinear_matrix(W, s))
        feat = jnp.einsum('hi,noij,wj->nohw', Lh, z, Lw)
        feats.append(feat)
    return jnp.concatenate(feats, axis=1)


if __name__ == "__main__":
    N, C, H, W = 2, 8, 16, 16
    Cout = C // 4

    key = jax.random.PRNGKey(0)
    kx, *kb = jax.random.split(key, 1 + 4 * len(POOL_SIZES))
    x = jax.random.normal(kx, (N, C, H, W), dtype=jnp.float32)

    conv_w, bn_gamma, bn_beta, bn_mean, bn_var = [], [], [], [], []
    for k in range(len(POOL_SIZES)):
        kw, kg, kbeta, kstat = kb[4 * k: 4 * k + 4]
        # nn.Conv2d(in_channels, out_channels, 1, bias=False) weight: (Cout, C, 1, 1)
        conv_w.append(jax.random.normal(kw, (Cout, C, 1, 1), dtype=jnp.float32) * 0.5)
        bn_gamma.append(jax.random.uniform(kg, (Cout,), minval=0.5, maxval=1.5))
        bn_beta.append(jax.random.normal(kbeta, (Cout,)) * 0.1)
        km, kv = jax.random.split(kstat)
        bn_mean.append(jax.random.normal(km, (Cout,)) * 0.1)
        bn_var.append(jax.random.uniform(kv, (Cout,), minval=0.5, maxval=1.5))

    out = pyramid_pooling(x, conv_w, bn_gamma, bn_beta, bn_mean, bn_var)
    out = jax.block_until_ready(out)

    ref = ref_forward(x, conv_w, bn_gamma, bn_beta, bn_mean, bn_var)
    assert out.shape == (N, 2 * C, H, W), out.shape
    assert jnp.allclose(out, ref, atol=1e-4, rtol=1e-4), float(jnp.max(jnp.abs(out - ref)))

    print("KERNEL_OK")
</pallas_src>

<mosaic_0001>
module attributes {stable_mosaic.version = 11 : i64} {
  func.func @_pool_conv_kernel(%arg0: i32, %arg1: i32, %arg2: memref<1x8x256xf32, #tpu.memory_space<vmem>>, %arg3: memref<256x32xf32, #tpu.memory_space<vmem>>, %arg4: memref<8x8xf32, #tpu.memory_space<vmem>>, %arg5: memref<8x1xf32, #tpu.memory_space<vmem>>, %arg6: memref<8x32xf32, #tpu.memory_space<vmem>>, %arg7: memref<1x8x32xf32, #tpu.memory_space<vmem>>, %arg8: memref<8x32xf32, #tpu.memory_space<vmem>>) attributes {dimension_semantics = [#tpu.dimension_semantics<parallel>, #tpu.dimension_semantics<arbitrary>], iteration_bounds = array<i64: 2, 1>, scalar_prefetch = 0 : i64, scratch_operands = 1 : i64, tpu.core_type = #tpu.core_type<tc>, window_params = [{transform_indices = @transform_0, window_bounds = array<i64: 1, 8, 256>}, {transform_indices = @transform_1, window_bounds = array<i64: 256, 32>}, {pipeline_mode = #tpu.pipeline_mode<synchronous>, transform_indices = @transform_2, window_bounds = array<i64: 8, 8>}, {pipeline_mode = #tpu.pipeline_mode<synchronous>, transform_indices = @transform_3, window_bounds = array<i64: 8, 1>}, {pipeline_mode = #tpu.pipeline_mode<synchronous>, transform_indices = @transform_4, window_bounds = array<i64: 8, 32>}, {transform_indices = @transform_5, window_bounds = array<i64: 1, 8, 32>}]} {
    %c0_i32 = arith.constant 0 : i32
    %0 = arith.cmpi eq, %arg1, %c0_i32 : i32
    %1 = arith.extui %0 : i1 to i32
    %c0_i32_0 = arith.constant 0 : i32
    %2 = arith.cmpi ne, %1, %c0_i32_0 : i32
    scf.if %2 {
      %cst_11 = arith.constant 0.000000e+00 : f32
      %13 = vector.broadcast %cst_11 : f32 to vector<8x32xf32>
      %c0_12 = arith.constant 0 : index
      %c0_13 = arith.constant 0 : index
      %14 = vector.load %arg8[%c0_12, %c0_13] : memref<8x32xf32, #tpu.memory_space<vmem>>, vector<8x32xf32>
      tpu.vector_store %arg8[%c0_12, %c0_13], %13 {strides = array<i32>} : memref<8x32xf32, #tpu.memory_space<vmem>>, vector<8x32xf32>,
    } else {
    }
    %c0 = arith.constant 0 : index
    %c0_1 = arith.constant 0 : index
    %c0_2 = arith.constant 0 : index
    %3 = vector.load %arg2[%c0, %c0_1, %c0_2] : memref<1x8x256xf32, #tpu.memory_space<vmem>>, vector<1x8x256xf32>
    %4 = vector.shape_cast %3 : vector<1x8x256xf32> to vector<8x256xf32>
    %c0_3 = arith.constant 0 : index
    %c0_4 = arith.constant 0 : index
    %5 = vector.load %arg8[%c0_3, %c0_4] : memref<8x32xf32, #tpu.memory_space<vmem>>, vector<8x32xf32>
    %c0_5 = arith.constant 0 : index
    %c0_6 = arith.constant 0 : index
    %6 = vector.load %arg3[%c0_5, %c0_6] : memref<256x32xf32, #tpu.memory_space<vmem>>, vector<256x32xf32>
    %cst = arith.constant dense<0.000000e+00> : vector<8x32xf32>
    %7 = tpu.matmul %4, %6, %cst {dimension_numbers = #tpu.dot_dimension_numbers<[1], [0], [0], [1], [0, 0, 1, 1], [], []>} : vector<8x256xf32>, vector<256x32xf32>, vector<8x32xf32> -> vector<8x32xf32>
    %8 = arith.addf %5, %7 : vector<8x32xf32>
    %c0_7 = arith.constant 0 : index
    %c0_8 = arith.constant 0 : index
    %9 = vector.load %arg8[%c0_7, %c0_8] : memref<8x32xf32, #tpu.memory_space<vmem>>, vector<8x32xf32>
    tpu.vector_store %arg8[%c0_7, %c0_8], %8 {strides = array<i32>} : memref<8x32xf32, #tpu.memory_space<vmem>>, vector<8x32xf32>,
    %c0_i32_9 = arith.constant 0 : i32
    %10 = arith.cmpi eq, %arg1, %c0_i32_9 : i32
    %11 = arith.extui %10 : i1 to i32
    %c0_i32_10 = arith.constant 0 : i32
    %12 = arith.cmpi ne, %11, %c0_i32_10 : i32
    scf.if %12 {
      %c0_11 = arith.constant 0 : index
      %c0_12 = arith.constant 0 : index
      %13 = vector.load %arg8[%c0_11, %c0_12] : memref<8x32xf32, #tpu.memory_space<vmem>>, vector<8x32xf32>
      %14 = vector.shape_cast %13 : vector<8x32xf32> to vector<1x8x32xf32>
      %c0_13 = arith.constant 0 : index
      %c0_14 = arith.constant 0 : index
      %15 = vector.load %arg4[%c0_13, %c0_14] : memref<8x8xf32, #tpu.memory_space<vmem>>, vector<8x8xf32>
      %16 = vector.shape_cast %15 : vector<8x8xf32> to vector<1x8x8xf32>
      "tpu.trace_start"() <{level = 10 : i32, message = "boc,bcs->bos"}> : () -> ()
      %cst_15 = arith.constant dense<0.000000e+00> : vector<1x8x32xf32>
      %17 = tpu.matmul %16, %14, %cst_15 {dimension_numbers = #tpu.dot_dimension_numbers<[2], [1], [1], [2], [0, 0, 0, 1, 1, 2], [0], [0]>} : vector<1x8x8xf32>, vector<1x8x32xf32>, vector<1x8x32xf32> -> vector<1x8x32xf32>
      "tpu.trace_stop"() : () -> ()
      %c0_16 = arith.constant 0 : index
      %c0_17 = arith.constant 0 : index
      %18 = vector.load %arg5[%c0_16, %c0_17] : memref<8x1xf32, #tpu.memory_space<vmem>>, vector<8x1xf32>
      %19 = vector.shape_cast %18 : vector<8x1xf32> to vector<1x8x1xf32>
      %20 = vector.broadcast %19 : vector<1x8x1xf32> to vector<1x8x32xf32>
      %21 = arith.addf %17, %20 : vector<1x8x32xf32>
      %cst_18 = arith.constant 0.000000e+00 : f32
      %22 = vector.broadcast %cst_18 : f32 to vector<1x8x32xf32>
      %23 = arith.maximumf %21, %22 : vector<1x8x32xf32>
      %c0_19 = arith.constant 0 : index
      %c0_20 = arith.constant 0 : index
      %24 = vector.load %arg6[%c0_19, %c0_20] : memref<8x32xf32, #tpu.memory_space<vmem>>, vector<8x32xf32>
      %25 = vector.shape_cast %24 : vector<8x32xf32> to vector<1x8x32xf32>
      %26 = arith.mulf %23, %25 : vector<1x8x32xf32>
      %c0_21 = arith.constant 0 : index
      %c0_22 = arith.constant 0 : index
      %c0_23 = arith.constant 0 : index
      %27 = vector.load %arg7[%c0_21, %c0_22, %c0_23] : memref<1x8x32xf32, #tpu.memory_space<vmem>>, vector<1x8x32xf32>
      tpu.vector_store %arg7[%c0_21, %c0_22, %c0_23], %26 {strides = array<i32>} : memref<1x8x32xf32, #tpu.memory_space<vmem>>, vector<1x8x32xf32>,
    } else {
    }
    return
  }
  func.func @transform_0(%arg0: i32, %arg1: i32) -> (i32, i32, i32) {
    %c0_i32 = arith.constant 0 : i32
    %c0_i32_0 = arith.constant 0 : i32
    return %arg0, %c0_i32, %arg1 : i32, i32, i32
  }
  func.func @transform_1(%arg0: i32, %arg1: i32) -> (i32, i32) {
    %c0_i32 = arith.constant 0 : i32
    %c0_i32_0 = arith.constant 0 : i32
    return %arg1, %c0_i32 : i32, i32
  }
  func.func @transform_2(%arg0: i32, %arg1: i32) -> (i32, i32) {
    %c0_i32 = arith.constant 0 : i32
    %c0_i32_0 = arith.constant 0 : i32
    %c0_i32_1 = arith.constant 0 : i32
    return %c0_i32, %c0_i32_0 : i32, i32
  }
  func.func @transform_3(%arg0: i32, %arg1: i32) -> (i32, i32) {
    %c0_i32 = arith.constant 0 : i32
    %c0_i32_0 = arith.constant 0 : i32
    %c0_i32_1 = arith.constant 0 : i32
    return %c0_i32, %c0_i32_0 : i32, i32
  }
  func.func @transform_4(%arg0: i32, %arg1: i32) -> (i32, i32) {
    %c0_i32 = arith.constant 0 : i32
    %c0_i32_0 = arith.constant 0 : i32
    %c0_i32_1 = arith.constant 0 : i32
    return %c0_i32, %c0_i32_0 : i32, i32
  }
  func.func @transform_5(%arg0: i32, %arg1: i32) -> (i32, i32, i32) {
    %c0_i32 = arith.constant 0 : i32
    %c0_i32_0 = arith.constant 0 : i32
    %c0_i32_1 = arith.constant 0 : i32
    return %arg0, %c0_i32, %c0_i32_0 : i32, i32, i32
  }
}

module attributes {stable_mosaic.version = 11 : i64} {
  func.func @_pool_conv_kernel(%arg0: i32, %arg1: i32, %arg2: memref<1x8x256xf32, #tpu.memory_space<vmem>>, %arg3: memref<256x32xf32, #tpu.memory_space<vmem>>, %arg4: memref<8x8xf32, #tpu.memory_space<vmem>>, %arg5: memref<8x1xf32, #tpu.memory_space<vmem>>, %arg6: memref<8x32xf32, #tpu.memory_space<vmem>>, %arg7: memref<1x8x32xf32, #tpu.memory_space<vmem>>, %arg8: memref<8x32xf32, #tpu.memory_space<vmem>>) attributes {dimension_semantics = [#tpu.dimension_semantics<parallel>, #tpu.dimension_semantics<arbitrary>], iteration_bounds = array<i64: 2, 1>, scalar_prefetch = 0 : i64, scratch_operands = 1 : i64, tpu.core_type = #tpu.core_type<tc>, window_params = [{transform_indices = @transform_0, window_bounds = array<i64: 1, 8, 256>}, {transform_indices = @transform_1, window_bounds = array<i64: 256, 32>}, {pipeline_mode = #tpu.pipeline_mode<synchronous>, transform_indices = @transform_2, window_bounds = array<i64: 8, 8>}, {pipeline_mode = #tpu.pipeline_mode<synchronous>, transform_indices = @transform_3, window_bounds = array<i64: 8, 1>}, {pipeline_mode = #tpu.pipeline_mode<synchronous>, transform_indices = @transform_4, window_bounds = array<i64: 8, 32>}, {transform_indices = @transform_5, window_bounds = array<i64: 1, 8, 32>}]} {
    %c0_i32 = arith.constant 0 : i32
    %0 = arith.cmpi eq, %arg1, %c0_i32 : i32
    %1 = arith.extui %0 : i1 to i32
    %c0_i32_0 = arith.constant 0 : i32
    %2 = arith.cmpi ne, %1, %c0_i32_0 : i32
    scf.if %2 {
      %cst_11 = arith.constant 0.000000e+00 : f32
      %13 = vector.broadcast %cst_11 : f32 to vector<8x32xf32>
      %c0_12 = arith.constant 0 : index
      %c0_13 = arith.constant 0 : index
      %14 = vector.load %arg8[%c0_12, %c0_13] : memref<8x32xf32, #tpu.memory_space<vmem>>, vector<8x32xf32>
      tpu.vector_store %arg8[%c0_12, %c0_13], %13 {strides = array<i32>} : memref<8x32xf32, #tpu.memory_space<vmem>>, vector<8x32xf32>,
    } else {
    }
    %c0 = arith.constant 0 : index
    %c0_1 = arith.constant 0 : index
    %c0_2 = arith.constant 0 : index
    %3 = vector.load %arg2[%c0, %c0_1, %c0_2] : memref<1x8x256xf32, #tpu.memory_space<vmem>>, vector<1x8x256xf32>
    %4 = vector.shape_cast %3 : vector<1x8x256xf32> to vector<8x256xf32>
    %c0_3 = arith.constant 0 : index
    %c0_4 = arith.constant 0 : index
    %5 = vector.load %arg8[%c0_3, %c0_4] : memref<8x32xf32, #tpu.memory_space<vmem>>, vector<8x32xf32>
    %c0_5 = arith.constant 0 : index
    %c0_6 = arith.constant 0 : index
    %6 = vector.load %arg3[%c0_5, %c0_6] : memref<256x32xf32, #tpu.memory_space<vmem>>, vector<256x32xf32>
    %cst = arith.constant dense<0.000000e+00> : vector<8x32xf32>
    %7 = tpu.matmul %4, %6, %cst {dimension_numbers = #tpu.dot_dimension_numbers<[1], [0], [0], [1], [0, 0, 1, 1], [], []>} : vector<8x256xf32>, vector<256x32xf32>, vector<8x32xf32> -> vector<8x32xf32>
    %8 = arith.addf %5, %7 : vector<8x32xf32>
    %c0_7 = arith.constant 0 : index
    %c0_8 = arith.constant 0 : index
    %9 = vector.load %arg8[%c0_7, %c0_8] : memref<8x32xf32, #tpu.memory_space<vmem>>, vector<8x32xf32>
    tpu.vector_store %arg8[%c0_7, %c0_8], %8 {strides = array<i32>} : memref<8x32xf32, #tpu.memory_space<vmem>>, vector<8x32xf32>,
    %c0_i32_9 = arith.constant 0 : i32
    %10 = arith.cmpi eq, %arg1, %c0_i32_9 : i32
    %11 = arith.extui %10 : i1 to i32
    %c0_i32_10 = arith.constant 0 : i32
    %12 = arith.cmpi ne, %11, %c0_i32_10 : i32
    scf.if %12 {
      %c0_11 = arith.constant 0 : index
      %c0_12 = arith.constant 0 : index
      %13 = vector.load %arg8[%c0_11, %c0_12] : memref<8x32xf32, #tpu.memory_space<vmem>>, vector<8x32xf32>
      %14 = vector.shape_cast %13 : vector<8x32xf32> to vector<1x8x32xf32>
      %c0_13 = arith.constant 0 : index
      %c0_14 = arith.constant 0 : index
      %15 = vector.load %arg4[%c0_13, %c0_14] : memref<8x8xf32, #tpu.memory_space<vmem>>, vector<8x8xf32>
      %16 = vector.shape_cast %15 : vector<8x8xf32> to vector<1x8x8xf32>
      "tpu.trace_start"() <{level = 10 : i32, message = "boc,bcs->bos"}> : () -> ()
      %cst_15 = arith.constant dense<0.000000e+00> : vector<1x8x32xf32>
      %17 = tpu.matmul %16, %14, %cst_15 {dimension_numbers = #tpu.dot_dimension_numbers<[2], [1], [1], [2], [0, 0, 0, 1, 1, 2], [0], [0]>} : vector<1x8x8xf32>, vector<1x8x32xf32>, vector<1x8x32xf32> -> vector<1x8x32xf32>
      "tpu.trace_stop"() : () -> ()
      %c0_16 = arith.constant 0 : index
      %c0_17 = arith.constant 0 : index
      %18 = vector.load %arg5[%c0_16, %c0_17] : memref<8x1xf32, #tpu.memory_space<vmem>>, vector<8x1xf32>
      %19 = vector.shape_cast %18 : vector<8x1xf32> to vector<1x8x1xf32>
      %20 = vector.broadcast %19 : vector<1x8x1xf32> to vector<1x8x32xf32>
      %21 = arith.addf %17, %20 : vector<1x8x32xf32>
      %cst_18 = arith.constant 0.000000e+00 : f32
      %22 = vector.broadcast %cst_18 : f32 to vector<1x8x32xf32>
      %23 = arith.maximumf %21, %22 : vector<1x8x32xf32>
      %c0_19 = arith.constant 0 : index
      %c0_20 = arith.constant 0 : index
      %24 = vector.load %arg6[%c0_19, %c0_20] : memref<8x32xf32, #tpu.memory_space<vmem>>, vector<8x32xf32>
      %25 = vector.shape_cast %24 : vector<8x32xf32> to vector<1x8x32xf32>
      %26 = arith.mulf %23, %25 : vector<1x8x32xf32>
      %c0_21 = arith.constant 0 : index
      %c0_22 = arith.constant 0 : index
      %c0_23 = arith.constant 0 : index
      %27 = vector.load %arg7[%c0_21, %c0_22, %c0_23] : memref<1x8x32xf32, #tpu.memory_space<vmem>>, vector<1x8x32xf32>
      tpu.vector_store %arg7[%c0_21, %c0_22, %c0_23], %26 {strides = array<i32>} : memref<1x8x32xf32, #tpu.memory_space<vmem>>, vector<1x8x32xf32>,
    } else {
    }
    return
  }
  func.func @transform_0(%arg0: i32, %arg1: i32) -> (i32, i32, i32) {
    %c0_i32 = arith.constant 0 : i32
    %c0_i32_0 = arith.constant 0 : i32
    return %arg0, %c0_i32, %arg1 : i32, i32, i32
  }
  func.func @transform_1(%arg0: i32, %arg1: i32) -> (i32, i32) {
    %c0_i32 = arith.constant 0 : i32
    %c0_i32_0 = arith.constant 0 : i32
    return %arg1, %c0_i32 : i32, i32
  }
  func.func @transform_2(%arg0: i32, %arg1: i32) -> (i32, i32) {
    %c0_i32 = arith.constant 0 : i32
    %c0_i32_0 = arith.constant 0 : i32
    %c0_i32_1 = arith.constant 0 : i32
    return %c0_i32, %c0_i32_0 : i32, i32
  }
  func.func @transform_3(%arg0: i32, %arg1: i32) -> (i32, i32) {
    %c0_i32 = arith.constant 0 : i32
    %c0_i32_0 = arith.constant 0 : i32
    %c0_i32_1 = arith.constant 0 : i32
    return %c0_i32, %c0_i32_0 : i32, i32
  }
  func.func @transform_4(%arg0: i32, %arg1: i32) -> (i32, i32) {
    %c0_i32 = arith.constant 0 : i32
    %c0_i32_0 = arith.constant 0 : i32
    %c0_i32_1 = arith.constant 0 : i32
    return %c0_i32, %c0_i32_0 : i32, i32
  }
  func.func @transform_5(%arg0: i32, %arg1: i32) -> (i32, i32, i32) {
    %c0_i32 = arith.constant 0 : i32
    %c0_i32_0 = arith.constant 0 : i32
    %c0_i32_1 = arith.constant 0 : i32
    return %arg0, %c0_i32, %c0_i32_0 : i32, i32, i32
  }
}

</mosaic_0001>

<bundles_post_ra>
// kernel: tpu_custom_call.1
= control target key start
LH: loop header
LB: loop body
LE: loop exit
PB: predicated region body
PF: predicated region fallthrough
CT: control target
= control target key end

     0   :  { %10 = vsyncpa [#allocation4], 0  ;;  %s1017_s0 = inlined_call_operand.vmem [shape: f32[2,8,256], index: 0, kind: input, shape index: {}]   ;;  %s1018_s1 = inlined_call_operand.vmem [shape: f32[256,32], index: 1, kind: input, shape index: {}]   ;;  %s1019_s2 = inlined_call_operand.vmem [shape: f32[8,8], index: 2, kind: input, shape index: {}]   ;;  %s1020_s3 = inlined_call_operand.vmem [shape: f32[8,1], index: 3, kind: input, shape index: {}]   ;;  %s1021_s4 = inlined_call_operand.vmem [shape: f32[8,32], index: 4, kind: input, shape index: {}]   ;;  %s1022_s5 = inlined_call_operand.hbm [shape: f32[2,8,32], index: 5, kind: output, shape index: {}]  }
   0x1   :  { %12 = vsyncpa [#allocation4 + $0x1], 0  ;;  %s806_s18 = smov 0   ;;  %s808_s19 = smov 0  }
   0x2   :  { %s810_s20 = smov 0   ;;  %s812_s21 = smov 0  }
   0x3   :  { %s814_s22 = smov 0   ;;  %s816_s23 = smov 0  }
   0x4 LB: > { %s578_s24 = sadd.s32 4294967295, %s770_s23   ;;  %s579_s25 = sadd.s32 4294967294, %s770_s23   ;;  %s770_s23 = sphi %s816_s23, %s18_s23   ;;  %s766_s22 = sphi %s814_s22, %s1029_s22   ;;  %s762_s21 = sphi %s812_s21, %s1028_s21   ;;  %s758_s20 = sphi %s810_s20, %s1027_s20   ;;  %s754_s19 = sphi %s808_s19, %s1026_s19   ;;  %s750_s18 = sphi %s806_s18, %s1025_s18  }
   0x5   : > { %s30_s26 = sadd.s32 1, %s766_s22  ;;  %s154_s27 = sadd.s32 1, %s758_s20 }
   0x6   : > { %p32_p0 = scmp.ge.s32.totalorder %s30_s26, 2  ;;  %p164_p1 = scmp.ne.s32.totalorder %s758_s20, %s754_s19 }
   0x7   : > { %p165_p2 = scmp.eq.s32.totalorder %s578_s24, 1  ;;  %p170_p3 = scmp.ne.s32.totalorder %s754_s19, %s750_s18 }
   0x8   : > { %s1031_s26 = smov (%p32_p0, %s30_s26), 0  ;;  %p171_p5 = scmp.eq.s32.totalorder %s579_s25, 1 }
   0x9   : > { %p846_p4 = por %p165_p2, %p164_p1  ;;  %s151_s29 = ssub.s32 %s766_s22, %s1031_s26 }
   0xa   : > { %p583_p6 = scmp.ge.s32.totalorder %s770_s23, 1  ;;  %p152_p7 = scmp.eq.s32.totalorder %s151_s29, 0 }
   0xb   : > { %p853_p8 = por %p171_p5, %p170_p3  ;;  %p220_p9 = scmp.lt.s32.totalorder %s770_s23, 3 }
   0xc   : > { %s859_s6 = scalar_select %p152_p7, %s758_s20, %s154_s27  }
   0xd   : > { %p221_p10 = pnand %p583_p6, %p220_p9 }
   0xe   : > { %p258_p11 = scmp.lt.s32.totalorder (!%p221_p10), %s762_s21, 1  ;;  %s254_s8 = sand.u32 (!%p221_p10), 1, %s754_s19  }
   0xf   : > { %224 = sbr.rel (%p221_p10) target bundleno = 473 (0x1d9), region = 40  ;;  %s589_s11 = sshll.u32 (!%p221_p10), %s762_s21, 7 }
  0x10   : > { %s477_s24 = scalar_lea.sflag (!%p221_p10), [#allocation4], %s254_s8  ;;  %s775_s27 = smov (!%p221_p10), [#allocation3]  }
  0x14   : > { %v313_v0 = vld [vmem:[%s1018_s1 + $0xf8] sm:$0xff]  ;;  %v312_v2 = vld [vmem:[%s1018_s1 + $0xf0] sm:$0xff]  ;;  %v311_v4 = vld [vmem:[%s1018_s1 + $0xe8] sm:$0xff]  ;;  %s259_s17 = scalar_select %p258_p11, %s762_s21, 1  ;;  %vm277_vm0 = vcmask 261120   ;;  %v772_v34 = vmov 0.0  }
  0x15   : > { %v297_v1 = vld [vmem:[%s1018_s1 + $0x78] sm:$0xff]  ;;  %593 = vmatprep.subr.mxu0 %v313_v0  ;;  %v296_v3 = vld [vmem:[%s1018_s1 + $0x70] sm:$0xff]  ;;  %v295_v5 = vld [vmem:[%s1018_s1 + $0x68] sm:$0xff]  ;;  %278 = vst.msk [vmem:[#allocation2] sm:$0xff] %vm277_vm0, %v772_v34  ;;  %630 = vmatprep.subr.mxu1 %v772_v34  ;;  %vm773_vm1 = vmmov 0   ;;  %v774_v36 = vmov 0  }
  0x16   : > { %594 = vmatpush3.msra.mxu0 %v297_v1  ;;  %v310_v6 = vld [vmem:[%s1018_s1 + $0xe0] sm:$0xff]  ;;  %s592_s7 = sshll.u32 %s259_s17, 4  ;;  %v309_v8 = vld [vmem:[%s1018_s1 + $0xd8] sm:$0xff]  ;;  %v308_v10 = vld [vmem:[%s1018_s1 + $0xd0] sm:$0xff]  ;;  %632 = vmatprep.mubr.msk.f32.mxu1 %vm773_vm1, %v772_v34  ;;  %vm398_vm2 = vcmask 64512   ;;  %s488_s17 = scalar_lea.hbm %s1022_s5, %s589_s11 }
  0x17   : > { %595 = vmatprep.subr.mxu0 %v312_v2  ;;  %v294_v7 = vld [vmem:[%s1018_s1 + $0x60] sm:$0xff]  ;;  %v293_v9 = vld [vmem:[%s1018_s1 + $0x58] sm:$0xff]  ;;  %s896_s16 = scalar_lea.vmem %s1017_s0, %s592_s7  ;;  %v292_v11 = vld [vmem:[%s1018_s1 + $0x50] sm:$0xff]  ;;  %693 = vset.pattern.permute.xlu0 %v774_v36  ;;  %s584_s7 = sshll.u32 %s254_s8, 3 }
  0x18   : > { %596 = vmatpush3.msra.mxu0 %v296_v3  ;;  %v307_v12 = vld [vmem:[%s1018_s1 + $0xc8] sm:$0xff]  ;;  %v306_v15 = vld [vmem:[%s1018_s1 + $0xc0] sm:$0xff]  ;;  %v305_v17 = vld [vmem:[%s1018_s1 + $0xb8] sm:$0xff]  ;;  %s256_s12 = scalar_lea.vmem [#allocation3], %s584_s7 }
  0x19   : > { %597 = vmatprep.subr.mxu0 %v311_v4  ;;  %v280_v13 = vld [vmem:[%s896_s16 + $0x8] sm:$0xff]  ;;  %v290_v16 = vld [vmem:[%s1018_s1 + $0x40] sm:$0xff]  ;;  %v289_v18 = vld [vmem:[%s1018_s1 + $0x38] sm:$0xff]  ;;  %s490_s13 = sshll.u32 %s256_s12, 4  ;;  %s491_s13 = int_to_ptr.vmem [resolvable:$true] %s490_s13 }
  0x1a   : > { %598 = vmatpush3.msra.mxu0 %v295_v5  ;;  %v291_v14 = vld [vmem:[%s1018_s1 + $0x48] sm:$0xff]  ;;  %378 = vmatprep.mubr.f32.mxu0 %v280_v13  ;;  %v304_v19 = vld [vmem:[%s1018_s1 + $0xb0] sm:$0xff]  ;;  %v302_v23 = vld [vmem:[%s1018_s1 + $0xa0] sm:$0xff]  ;;  %s694_s25 = scalar_lea.vmem %s491_s13, 128 }
  0x1b   : > { %599 = vmatprep.subr.mxu0 %v310_v6  ;;  %v288_v20 = vld [vmem:[%s1018_s1 + $0x30] sm:$0xff]  ;;  %v303_v21 = vld [vmem:[%s1018_s1 + $0xa8] sm:$0xff]  ;;  %v286_v24 = vld [vmem:[%s1018_s1 + $0x20] sm:$0xff]  ;;  %p695_p12 = scmp.ne.s32.totalorder %s491_s13, %s694_s25 }
  0x1c   : > { %600 = vmatpush3.msra.mxu0 %v294_v7  ;;  %v287_v22 = vld [vmem:[%s1018_s1 + $0x28] sm:$0xff]  ;;  %v301_v25 = vld [vmem:[%s1018_s1 + $0x98] sm:$0xff]  ;;  %v300_v27 = vld [vmem:[%s1018_s1 + $0x90] sm:$0xff] }
  0x1d   : > { %601 = vmatprep.subr.mxu0 %v309_v8  ;;  %v285_v26 = vld [vmem:[%s1018_s1 + $0x18] sm:$0xff]  ;;  %v284_v28 = vld [vmem:[%s1018_s1 + $0x10] sm:$0xff]  ;;  %v299_v29 = vld [vmem:[%s1018_s1 + $0x88] sm:$0xff]  ;;  %p696_p13 = pnand %p695_p12, %p846_p4 }
  0x1e   : > { %602 = vmatpush3.msra.mxu0 %v293_v9  ;;  %v283_v30 = vld [vmem:[%s1018_s1 + $0x8] sm:$0xff]  ;;  %v298_v31 = vld [vmem:[%s1018_s1 + $0x80] sm:$0xff] }
  0x1f   : > { %603 = vmatprep.subr.mxu0 %v308_v10  ;;  %v282_v32 = vld [vmem:[%s1018_s1] sm:$0xff]  ;;  %p697_p0 = pneg %p696_p13 }
  0x20   : > { %604 = vmatpush3.msra.mxu0 %v292_v11  ;;  %v279_v33 = vld [vmem:[%s896_s16] sm:$0xff]  ;;  %s698_s16 = sshll.u32 %s775_s27, 4  ;;  %s699_s16 = int_to_ptr.vmem [resolvable:$false] %s698_s16 }
  0x21   : > { %605 = vmatprep.subr.mxu0 %v307_v12  ;;  %v392_v35 = vld [vmem:[%s1020_s3] sm:$0xff]  ;;  %s700_s21 = scalar_lea.vmem %s699_s16, 256  ;;  %p701_p1 = scmp.lt.s32.totalorder %s491_s13, %s699_s16 }
  0x22   : > { %606 = vmatpush3.msra.mxu0 %v291_v14  ;;  %395 = vperm.xlu0 %693, %v392_v35   ;;  %v281_v39 = vld [vmem:[#allocation2] sm:$0xff]  ;;  %p702_p2 = scmp.lt.s32.totalorder %s700_s21, %s694_s25 }
  0x23   : > { %607 = vmatprep.subr.mxu0 %v306_v15  ;;  %v391_v42 = vld [vmem:[%s1019_s2] sm:$0xff] }
  0x24   : > { %608 = vmatpush3.msra.mxu0 %v290_v16  ;;  %v473_v47 = vld [vmem:[%s1021_s4] sm:$0xff]  ;;  %p703_p3 = por %p702_p2, %p701_p1 }
  0x25   : > { %609 = vmatprep.subr.mxu0 %v305_v17 }
  0x26   : > { %610 = vmatpush3.msra.mxu0 %v289_v18  ;;  %p704_p5 = pnand %p703_p3, %p697_p0 }
  0x27   : > { %611 = vmatprep.subr.mxu0 %v304_v19 }
  0x28   : > { %612 = vmatpush3.msra.mxu0 %v288_v20 }
  0x29   : > { %613 = vmatprep.subr.mxu0 %v303_v21 }
  0x2a   : > { %614 = vmatpush3.msra.mxu0 %v287_v22 }
  0x2b   : > { %615 = vmatprep.subr.mxu0 %v302_v23 }
  0x2c   : > { %616 = vmatpush3.msra.mxu0 %v286_v24 }
  0x2d   : > { %617 = vmatprep.subr.mxu0 %v301_v25 }
  0x2e   : > { %618 = vmatpush3.msra.mxu0 %v285_v26 }
  0x2f   : > { %619 = vmatprep.subr.mxu0 %v300_v27 }
  0x30   : > { %620 = vmatpush3.msra.mxu0 %v284_v28 }
  0x31   : > { %621 = vmatprep.subr.mxu0 %v299_v29 }
  0x32   : > { %622 = vmatpush3.msra.mxu0 %v283_v30 }
  0x33   : > { %623 = vmatprep.subr.mxu0 %v298_v31 }
  0x34   : > { %624 = vmatpush3.msra.mxu0 %v282_v32 }
  0x35   : > { %379 = vmatmul.mubr.f32.vlgmr.msra.gmra.mxu0 %v279_v33 }
  0x9d   : > { %v396_v44 = vpop.permute.xlu0 %395 }
  0xf5   : > { %v625_v37 = vpop.f32.mrf.mxu0 }
  0xf7   : > { %v626_v38 = vpop.f32.mrf.mxu0 }
  0xf8   : > { %v627_v40 = vadd.f32 %v626_v38, %v625_v37 }
  0xfa   : > { %v384_v41 = vadd.f32 %v627_v40, %v281_v39 }
  0xfc   : > { %386 = vst.msk [vmem:[#allocation2] sm:$0xff] %vm277_vm0, %v384_v41 }
 0x103   : > { %v390_v43 = vld [vmem:[#allocation2] sm:$0xff] }
 0x104   : > { %631 = vmatpush3.msra.mxu1 %v390_v43 }
 0x105   : > { %633 = vmatmul.mubr.msk.f32.vlgmr.msra.gmra.mxu1 %vm398_vm2, %v391_v42 }
 0x1c5   : > { %v468_v45 = vpop.f32.mrf.mxu1 }
 0x1c6   : > { %v469_v46 = vadd.f32 %v468_v45, %v396_v44 }
 0x1c7   : > { %v634_v48 = vpop.f32.mrf.mxu1 }
 0x1c8   : > { %v472_v49 = vmax.f32 %v469_v46, 0.0 }
 0x1ca   : > { %v474_v50 = vmul.f32 %v473_v47, %v472_v49 }
 0x1cc   : > { %475 = vst.msk [vmem:[%s256_s12] sm:$0xff] %vm277_vm0, %v474_v50 }
 0x1cd   : > { %707 = shalt.err (!%p704_p5)
}
 0x1ce   : > { %s708_s29 = scalar_lea.hbm %s488_s17, 128  ;;  %s712_s9 = scalar_lea.hbm %s1022_s5, 256 }
 0x1cf   : > { %p709_p6 = scmp.ne.s32.totalorder %s488_s17, %s708_s29  ;;  %p713_p10 = scmp.lt.s32.totalorder %s488_s17, %s1022_s5 }
 0x1d0   : > { %p714_p11 = scmp.lt.s32.totalorder %s712_s9, %s708_s29 }
 0x1d1   : > { %p710_p7 = pnand %p709_p6, %p846_p4 }
 0x1d2   : > { %p715_p12 = por %p714_p11, %p713_p10 }
 0x1d3   : > { %p711_p9 = pneg %p710_p7 }
 0x1d5   : > { %p716_p13 = pnand %p715_p12, %p711_p9 }
 0x1d7   : > { %719 = shalt.err (!%p716_p13)
}
 0x1d8   : > { %635 = dma.vmem_to_hbm [thread:$0]  (%p846_p4), %s491_s13, 128, %s488_s17, %s477_s24  }
 0x1d9 PF: > { %p641_p0 = scmp.ge.s32.totalorder %s770_s23, 2  ;;  %s502_s12 = sand.u32 1, %s750_s18  }
 0x1da   : > { %s503_s14 = scalar_lea.sflag [#allocation4], %s502_s12 }
 0x1db   : > { %p638_p1 = pnand %p641_p0, %p853_p8 }
 0x1dd   : > { %p639_p2 = pneg %p638_p1 }
 0x1df   : > { %745 = dma.done.wait (%p639_p2), %s503_s14, 128  }
 0x1e0   : > { %747 = vsyncadd (%p639_p2), %s503_s14, 4294967168  ;;  %s18_s23 = sadd.s32 1, %s770_s23   ;;  %s1025_s18 = smov %s754_s19 }
 0x1e1   : > { %p15_p3 = scmp.ge.s32.totalorder %s18_s23, 4   ;;  %s1026_s19 = smov %s758_s20 }
 0x1e2   : > { %s1027_s20 = smov %s859_s6  ;;  %s1028_s21 = smov %s766_s22 }
 0x1e3   : > { %s1029_s22 = smov %s1031_s26  ;;  %17 = sbr.rel (!%p15_p3) target bundleno = 4 (0x4), region = 86 }
 0x1e8   :  { %508 = vsyncpa [#allocation4], 1 }
 0x1e9   :  { %510 = vsyncpa [#allocation4 + $0x1], 1 }

// kernel: tpu_custom_call.1
= control target key start
LH: loop header
LB: loop body
LE: loop exit
PB: predicated region body
PF: predicated region fallthrough
CT: control target
= control target key end

     0   :  { %10 = vsyncpa [#allocation4], 0  ;;  %s1017_s0 = inlined_call_operand.vmem [shape: f32[2,8,256], index: 0, kind: input, shape index: {}]   ;;  %s1018_s1 = inlined_call_operand.vmem [shape: f32[256,32], index: 1, kind: input, shape index: {}]   ;;  %s1019_s2 = inlined_call_operand.vmem [shape: f32[8,8], index: 2, kind: input, shape index: {}]   ;;  %s1020_s3 = inlined_call_operand.vmem [shape: f32[8,1], index: 3, kind: input, shape index: {}]   ;;  %s1021_s4 = inlined_call_operand.vmem [shape: f32[8,32], index: 4, kind: input, shape index: {}]   ;;  %s1022_s5 = inlined_call_operand.hbm [shape: f32[2,8,32], index: 5, kind: output, shape index: {}]  }
   0x1   :  { %12 = vsyncpa [#allocation4 + $0x1], 0  ;;  %s806_s18 = smov 0   ;;  %s808_s19 = smov 0  }
   0x2   :  { %s810_s20 = smov 0   ;;  %s812_s21 = smov 0  }
   0x3   :  { %s814_s22 = smov 0   ;;  %s816_s23 = smov 0  }
   0x4 LB: > { %s578_s24 = sadd.s32 4294967295, %s770_s23   ;;  %s579_s25 = sadd.s32 4294967294, %s770_s23   ;;  %s770_s23 = sphi %s816_s23, %s18_s23   ;;  %s766_s22 = sphi %s814_s22, %s1029_s22   ;;  %s762_s21 = sphi %s812_s21, %s1028_s21   ;;  %s758_s20 = sphi %s810_s20, %s1027_s20   ;;  %s754_s19 = sphi %s808_s19, %s1026_s19   ;;  %s750_s18 = sphi %s806_s18, %s1025_s18  }
   0x5   : > { %s30_s26 = sadd.s32 1, %s766_s22  ;;  %s154_s27 = sadd.s32 1, %s758_s20 }
   0x6   : > { %p32_p0 = scmp.ge.s32.totalorder %s30_s26, 2  ;;  %p164_p1 = scmp.ne.s32.totalorder %s758_s20, %s754_s19 }
   0x7   : > { %p165_p2 = scmp.eq.s32.totalorder %s578_s24, 1  ;;  %p170_p3 = scmp.ne.s32.totalorder %s754_s19, %s750_s18 }
   0x8   : > { %s1031_s26 = smov (%p32_p0, %s30_s26), 0  ;;  %p171_p5 = scmp.eq.s32.totalorder %s579_s25, 1 }
   0x9   : > { %p846_p4 = por %p165_p2, %p164_p1  ;;  %s151_s29 = ssub.s32 %s766_s22, %s1031_s26 }
   0xa   : > { %p583_p6 = scmp.ge.s32.totalorder %s770_s23, 1  ;;  %p152_p7 = scmp.eq.s32.totalorder %s151_s29, 0 }
   0xb   : > { %p853_p8 = por %p171_p5, %p170_p3  ;;  %p220_p9 = scmp.lt.s32.totalorder %s770_s23, 3 }
   0xc   : > { %s859_s6 = scalar_select %p152_p7, %s758_s20, %s154_s27  }
   0xd   : > { %p221_p10 = pnand %p583_p6, %p220_p9 }
   0xe   : > { %p258_p11 = scmp.lt.s32.totalorder (!%p221_p10), %s762_s21, 1  ;;  %s254_s8 = sand.u32 (!%p221_p10), 1, %s754_s19  }
   0xf   : > { %224 = sbr.rel (%p221_p10) target bundleno = 473 (0x1d9), region = 40  ;;  %s589_s11 = sshll.u32 (!%p221_p10), %s762_s21, 7 }
  0x10   : > { %s477_s24 = scalar_lea.sflag (!%p221_p10), [#allocation4], %s254_s8  ;;  %s775_s27 = smov (!%p221_p10), [#allocation3]  }
  0x14   : > { %v313_v0 = vld [vmem:[%s1018_s1 + $0xf8] sm:$0xff]  ;;  %v312_v2 = vld [vmem:[%s1018_s1 + $0xf0] sm:$0xff]  ;;  %v311_v4 = vld [vmem:[%s1018_s1 + $0xe8] sm:$0xff]  ;;  %s259_s17 = scalar_select %p258_p11, %s762_s21, 1  ;;  %vm277_vm0 = vcmask 261120   ;;  %v772_v34 = vmov 0.0  }
  0x15   : > { %v297_v1 = vld [vmem:[%s1018_s1 + $0x78] sm:$0xff]  ;;  %593 = vmatprep.subr.mxu0 %v313_v0  ;;  %v296_v3 = vld [vmem:[%s1018_s1 + $0x70] sm:$0xff]  ;;  %v295_v5 = vld [vmem:[%s1018_s1 + $0x68] sm:$0xff]  ;;  %278 = vst.msk [vmem:[#allocation2] sm:$0xff] %vm277_vm0, %v772_v34  ;;  %630 = vmatprep.subr.mxu1 %v772_v34  ;;  %vm773_vm1 = vmmov 0   ;;  %v774_v36 = vmov 0  }
  0x16   : > { %594 = vmatpush3.msra.mxu0 %v297_v1  ;;  %v310_v6 = vld [vmem:[%s1018_s1 + $0xe0] sm:$0xff]  ;;  %s592_s7 = sshll.u32 %s259_s17, 4  ;;  %v309_v8 = vld [vmem:[%s1018_s1 + $0xd8] sm:$0xff]  ;;  %v308_v10 = vld [vmem:[%s1018_s1 + $0xd0] sm:$0xff]  ;;  %632 = vmatprep.mubr.msk.f32.mxu1 %vm773_vm1, %v772_v34  ;;  %vm398_vm2 = vcmask 64512   ;;  %s488_s17 = scalar_lea.hbm %s1022_s5, %s589_s11 }
  0x17   : > { %595 = vmatprep.subr.mxu0 %v312_v2  ;;  %v294_v7 = vld [vmem:[%s1018_s1 + $0x60] sm:$0xff]  ;;  %v293_v9 = vld [vmem:[%s1018_s1 + $0x58] sm:$0xff]  ;;  %s896_s16 = scalar_lea.vmem %s1017_s0, %s592_s7  ;;  %v292_v11 = vld [vmem:[%s1018_s1 + $0x50] sm:$0xff]  ;;  %693 = vset.pattern.permute.xlu0 %v774_v36  ;;  %s584_s7 = sshll.u32 %s254_s8, 3 }
  0x18   : > { %596 = vmatpush3.msra.mxu0 %v296_v3  ;;  %v307_v12 = vld [vmem:[%s1018_s1 + $0xc8] sm:$0xff]  ;;  %v306_v15 = vld [vmem:[%s1018_s1 + $0xc0] sm:$0xff]  ;;  %v305_v17 = vld [vmem:[%s1018_s1 + $0xb8] sm:$0xff]  ;;  %s256_s12 = scalar_lea.vmem [#allocation3], %s584_s7 }
  0x19   : > { %597 = vmatprep.subr.mxu0 %v311_v4  ;;  %v280_v13 = vld [vmem:[%s896_s16 + $0x8] sm:$0xff]  ;;  %v290_v16 = vld [vmem:[%s1018_s1 + $0x40] sm:$0xff]  ;;  %v289_v18 = vld [vmem:[%s1018_s1 + $0x38] sm:$0xff]  ;;  %s490_s13 = sshll.u32 %s256_s12, 4  ;;  %s491_s13 = int_to_ptr.vmem [resolvable:$true] %s490_s13 }
  0x1a   : > { %598 = vmatpush3.msra.mxu0 %v295_v5  ;;  %v291_v14 = vld [vmem:[%s1018_s1 + $0x48] sm:$0xff]  ;;  %378 = vmatprep.mubr.f32.mxu0 %v280_v13  ;;  %v304_v19 = vld [vmem:[%s1018_s1 + $0xb0] sm:$0xff]  ;;  %v302_v23 = vld [vmem:[%s1018_s1 + $0xa0] sm:$0xff]  ;;  %s694_s25 = scalar_lea.vmem %s491_s13, 128 }
  0x1b   : > { %599 = vmatprep.subr.mxu0 %v310_v6  ;;  %v288_v20 = vld [vmem:[%s1018_s1 + $0x30] sm:$0xff]  ;;  %v303_v21 = vld [vmem:[%s1018_s1 + $0xa8] sm:$0xff]  ;;  %v286_v24 = vld [vmem:[%s1018_s1 + $0x20] sm:$0xff]  ;;  %p695_p12 = scmp.ne.s32.totalorder %s491_s13, %s694_s25 }
  0x1c   : > { %600 = vmatpush3.msra.mxu0 %v294_v7  ;;  %v287_v22 = vld [vmem:[%s1018_s1 + $0x28] sm:$0xff]  ;;  %v301_v25 = vld [vmem:[%s1018_s1 + $0x98] sm:$0xff]  ;;  %v300_v27 = vld [vmem:[%s1018_s1 + $0x90] sm:$0xff] }
  0x1d   : > { %601 = vmatprep.subr.mxu0 %v309_v8  ;;  %v285_v26 = vld [vmem:[%s1018_s1 + $0x18] sm:$0xff]  ;;  %v284_v28 = vld [vmem:[%s1018_s1 + $0x10] sm:$0xff]  ;;  %v299_v29 = vld [vmem:[%s1018_s1 + $0x88] sm:$0xff]  ;;  %p696_p13 = pnand %p695_p12, %p846_p4 }
  0x1e   : > { %602 = vmatpush3.msra.mxu0 %v293_v9  ;;  %v283_v30 = vld [vmem:[%s1018_s1 + $0x8] sm:$0xff]  ;;  %v298_v31 = vld [vmem:[%s1018_s1 + $0x80] sm:$0xff] }
  0x1f   : > { %603 = vmatprep.subr.mxu0 %v308_v10  ;;  %v282_v32 = vld [vmem:[%s1018_s1] sm:$0xff]  ;;  %p697_p0 = pneg %p696_p13 }
  0x20   : > { %604 = vmatpush3.msra.mxu0 %v292_v11  ;;  %v279_v33 = vld [vmem:[%s896_s16] sm:$0xff]  ;;  %s698_s16 = sshll.u32 %s775_s27, 4  ;;  %s699_s16 = int_to_ptr.vmem [resolvable:$false] %s698_s16 }
  0x21   : > { %605 = vmatprep.subr.mxu0 %v307_v12  ;;  %v392_v35 = vld [vmem:[%s1020_s3] sm:$0xff]  ;;  %s700_s21 = scalar_lea.vmem %s699_s16, 256  ;;  %p701_p1 = scmp.lt.s32.totalorder %s491_s13, %s699_s16 }
  0x22   : > { %606 = vmatpush3.msra.mxu0 %v291_v14  ;;  %395 = vperm.xlu0 %693, %v392_v35   ;;  %v281_v39 = vld [vmem:[#allocation2] sm:$0xff]  ;;  %p702_p2 = scmp.lt.s32.totalorder %s700_s21, %s694_s25 }
  0x23   : > { %607 = vmatprep.subr.mxu0 %v306_v15  ;;  %v391_v42 = vld [vmem:[%s1019_s2] sm:$0xff] }
  0x24   : > { %608 = vmatpush3.msra.mxu0 %v290_v16  ;;  %v473_v47 = vld [vmem:[%s1021_s4] sm:$0xff]  ;;  %p703_p3 = por %p702_p2, %p701_p1 }
  0x25   : > { %609 = vmatprep.subr.mxu0 %v305_v17 }
  0x26   : > { %610 = vmatpush3.msra.mxu0 %v289_v18  ;;  %p704_p5 = pnand %p703_p3, %p697_p0 }
  0x27   : > { %611 = vmatprep.subr.mxu0 %v304_v19 }
  0x28   : > { %612 = vmatpush3.msra.mxu0 %v288_v20 }
  0x29   : > { %613 = vmatprep.subr.mxu0 %v303_v21 }
  0x2a   : > { %614 = vmatpush3.msra.mxu0 %v287_v22 }
  0x2b   : > { %615 = vmatprep.subr.mxu0 %v302_v23 }
  0x2c   : > { %616 = vmatpush3.msra.mxu0 %v286_v24 }
  0x2d   : > { %617 = vmatprep.subr.mxu0 %v301_v25 }
  0x2e   : > { %618 = vmatpush3.msra.mxu0 %v285_v26 }
  0x2f   : > { %619 = vmatprep.subr.mxu0 %v300_v27 }
  0x30   : > { %620 = vmatpush3.msra.mxu0 %v284_v28 }
  0x31   : > { %621 = vmatprep.subr.mxu0 %v299_v29 }
  0x32   : > { %622 = vmatpush3.msra.mxu0 %v283_v30 }
  0x33   : > { %623 = vmatprep.subr.mxu0 %v298_v31 }
  0x34   : > { %624 = vmatpush3.msra.mxu0 %v282_v32 }
  0x35   : > { %379 = vmatmul.mubr.f32.vlgmr.msra.gmra.mxu0 %v279_v33 }
  0x9d   : > { %v396_v44 = vpop.permute.xlu0 %395 }
  0xf5   : > { %v625_v37 = vpop.f32.mrf.mxu0 }
  0xf7   : > { %v626_v38 = vpop.f32.mrf.mxu0 }
  0xf8   : > { %v627_v40 = vadd.f32 %v626_v38, %v625_v37 }
  0xfa   : > { %v384_v41 = vadd.f32 %v627_v40, %v281_v39 }
  0xfc   : > { %386 = vst.msk [vmem:[#allocation2] sm:$0xff] %vm277_vm0, %v384_v41 }
 0x103   : > { %v390_v43 = vld [vmem:[#allocation2] sm:$0xff] }
 0x104   : > { %631 = vmatpush3.msra.mxu1 %v390_v43 }
 0x105   : > { %633 = vmatmul.mubr.msk.f32.vlgmr.msra.gmra.mxu1 %vm398_vm2, %v391_v42 }
 0x1c5   : > { %v468_v45 = vpop.f32.mrf.mxu1 }
 0x1c6   : > { %v469_v46 = vadd.f32 %v468_v45, %v396_v44 }
 0x1c7   : > { %v634_v48 = vpop.f32.mrf.mxu1 }
 0x1c8   : > { %v472_v49 = vmax.f32 %v469_v46, 0.0 }
 0x1ca   : > { %v474_v50 = vmul.f32 %v473_v47, %v472_v49 }
 0x1cc   : > { %475 = vst.msk [vmem:[%s256_s12] sm:$0xff] %vm277_vm0, %v474_v50 }
 0x1cd   : > { %707 = shalt.err (!%p704_p5)
}
 0x1ce   : > { %s708_s29 = scalar_lea.hbm %s488_s17, 128  ;;  %s712_s9 = scalar_lea.hbm %s1022_s5, 256 }
 0x1cf   : > { %p709_p6 = scmp.ne.s32.totalorder %s488_s17, %s708_s29  ;;  %p713_p10 = scmp.lt.s32.totalorder %s488_s17, %s1022_s5 }
 0x1d0   : > { %p714_p11 = scmp.lt.s32.totalorder %s712_s9, %s708_s29 }
 0x1d1   : > { %p710_p7 = pnand %p709_p6, %p846_p4 }
 0x1d2   : > { %p715_p12 = por %p714_p11, %p713_p10 }
 0x1d3   : > { %p711_p9 = pneg %p710_p7 }
 0x1d5   : > { %p716_p13 = pnand %p715_p12, %p711_p9 }
 0x1d7   : > { %719 = shalt.err (!%p716_p13)
}
 0x1d8   : > { %635 = dma.vmem_to_hbm [thread:$0]  (%p846_p4), %s491_s13, 128, %s488_s17, %s477_s24  }
 0x1d9 PF: > { %p641_p0 = scmp.ge.s32.totalorder %s770_s23, 2  ;;  %s502_s12 = sand.u32 1, %s750_s18  }
 0x1da   : > { %s503_s14 = scalar_lea.sflag [#allocation4], %s502_s12 }
 0x1db   : > { %p638_p1 = pnand %p641_p0, %p853_p8 }
 0x1dd   : > { %p639_p2 = pneg %p638_p1 }
 0x1df   : > { %745 = dma.done.wait (%p639_p2), %s503_s14, 128  }
 0x1e0   : > { %747 = vsyncadd (%p639_p2), %s503_s14, 4294967168  ;;  %s18_s23 = sadd.s32 1, %s770_s23   ;;  %s1025_s18 = smov %s754_s19 }
 0x1e1   : > { %p15_p3 = scmp.ge.s32.totalorder %s18_s23, 4   ;;  %s1026_s19 = smov %s758_s20 }
 0x1e2   : > { %s1027_s20 = smov %s859_s6  ;;  %s1028_s21 = smov %s766_s22 }
 0x1e3   : > { %s1029_s22 = smov %s1031_s26  ;;  %17 = sbr.rel (!%p15_p3) target bundleno = 4 (0x4), region = 86 }
 0x1e8   :  { %508 = vsyncpa [#allocation4], 1 }
 0x1e9   :  { %510 = vsyncpa [#allocation4 + $0x1], 1 }

</bundles_post_ra>
